<compile_context>
chip_gen: v7x
topology: tpu7x:2x2x1
jax: 0.10.0
libtpu: 0.0.40
codegen_flags: <defaults>
</compile_context>

<pallas_src>
import functools

import jax
import jax.numpy as jnp
from jax.experimental import pallas as pl
from jax.experimental.pallas import tpu as pltpu


def _round_up(x, m):
    return ((x + m - 1) // m) * m


def _cdiv(a, b):
    return (a + b - 1) // b


def ffn_kernel(x_ref, w1_ref, b1_ref, w2_ref, b2_ref, o_ref, acc_ref, *,
               compute_dtype):
    """One (tile_m, H) row tile x one intermediate-channel chunk.

    grid = (row_tiles, k_chunks).  Axis 1 reduces over the intermediate
    (conv1 output) channels; in the common case the weights are VMEM-resident
    and k_chunks == 1, so this collapses to a single fused pass.
    """
    k = pl.program_id(1)

    @pl.when(k == 0)
    def _init():
        acc_ref[...] = jnp.zeros_like(acc_ref)

    x = x_ref[...].astype(compute_dtype)          # in-kernel cast: bf16 MXU operands
    h = jnp.dot(x, w1_ref[...], preferred_element_type=jnp.float32) + b1_ref[...]
    h = jnp.maximum(h, 0.0)                       # ReLU
    # TODO(synk): dropout omitted (identity in eval / inference mode).
    h = h.astype(compute_dtype)                   # bf16 operands for the 2nd MXU pass
    acc_ref[...] += jnp.dot(h, w2_ref[...], preferred_element_type=jnp.float32)

    @pl.when(k == pl.num_programs(1) - 1)
    def _finish():
        o_ref[...] = (acc_ref[...] + b2_ref[...]).astype(o_ref.dtype)


def _vmem_bytes(tile_m, h, tk, x_isz, w_isz, o_isz):
    # Conservative: weights/biases counted double-buffered so the plan also
    # fits if the single-buffer (Buffered(1)) request is rejected.
    weights = 2 * (h * tk + tk * h) * w_isz
    biases = 2 * (tk + h) * 4
    x_buf = 2 * tile_m * h * x_isz
    o_buf = 2 * tile_m * h * o_isz
    acc = tile_m * h * 4
    return weights + biases + x_buf + o_buf + acc


def _vmem_budget_bytes():
    try:
        cap = int(pltpu.get_tpu_info().vmem_capacity_bytes)
    except Exception:
        cap = 64 * 1024 * 1024  # conservative default == v7x per-TC VMEM
    # ~18% headroom for Mosaic internal scratch / spill buffers:
    #   v7x 64 MiB -> ~52 MiB;  v5e/v6e 128 MiB -> ~105 MiB.
    return int(cap * 0.82)


def _choose_tiling(n, h, x_isz, w_isz, o_isz, budget):
    # Row tile: as large as fits, but always leaving >= 2 row steps when N > 8
    # so the 'parallel' row axis can shard across both v7x TensorCores.
    row_cap = 8 if n <= 8 else min(1024, _round_up(_cdiv(n, 2), 8))

    # Intermediate-channel chunk: prefer whole H (VMEM-resident weights), else
    # fall back to 128-multiples (reduction grid axis + f32 accumulator).
    tk_cands = [h] + [t for t in (4096, 2048, 1024, 512, 256, 128) if t < h]
    for tk in tk_cands:
        tile_m = row_cap
        while tile_m > 8 and _vmem_bytes(tile_m, h, tk, x_isz, w_isz, o_isz) > budget:
            tile_m = max(8, _round_up(tile_m // 2, 8))
        if _vmem_bytes(tile_m, h, tk, x_isz, w_isz, o_isz) <= budget:
            return tile_m, tk
    return 8, tk_cands[-1]  # may exceed budget; last resort


def ffn_pallas(x, w1, b1, w2, b2, *, compute_dtype=jnp.bfloat16, tile_m=None):
    """FFN forward (eval): y = relu(x @ w1.T + b1) @ w2.T + b2, per position.

    x: (B, L, H).  w1, w2: (H, H) Conv1d weights laid out (out_ch, in_ch).
    b1, b2: (H,).  compute_dtype controls the MXU operand dtype (bf16 default;
    pass jnp.float32 for high-precision checks); accumulation is always f32.
    """
    B, L, H = x.shape
    N = B * L
    out_dtype = x.dtype

    x_isz = jnp.dtype(x.dtype).itemsize
    w_isz = jnp.dtype(compute_dtype).itemsize
    o_isz = jnp.dtype(out_dtype).itemsize

    budget = _vmem_budget_bytes()
    auto_tile_m, tk = _choose_tiling(N, H, x_isz, w_isz, o_isz, budget)
    if tile_m is None:
        tile_m = auto_tile_m
    tile_m = max(8, _round_up(min(tile_m, _round_up(N, 8)), 8))

    n_row_tiles = _cdiv(N, tile_m)      # partial last block: masked by Pallas
    k_chunks = _cdiv(H, tk)
    Hk = k_chunks * tk                  # intermediate dim (padded only if chunked)

    # ---- host-side parameter prep (weights only; x / output are NOT padded) ----
    x2d = x.reshape(N, H)                                   # view, no copy/pad
    w1t = w1.T.astype(compute_dtype)                        # (in, out): x @ w1t
    w2t = w2.T.astype(compute_dtype)
    b1r = b1.reshape(1, H).astype(jnp.float32)
    b2r = b2.reshape(1, H).astype(jnp.float32)
    if Hk != H:  # pad the intermediate channel dim only; zero pads are exact
        w1t = jnp.pad(w1t, ((0, 0), (0, Hk - H)))
        w2t = jnp.pad(w2t, ((0, Hk - H), (0, 0)))
        b1r = jnp.pad(b1r, ((0, 0), (0, Hk - H)))

    grid = (n_row_tiles, k_chunks)
    kernel = functools.partial(ffn_kernel, compute_dtype=compute_dtype)

    weight_bytes = 2 * H * Hk * w_isz
    cost = pl.CostEstimate(
        flops=4 * N * H * Hk,
        transcendentals=0,
        bytes_accessed=int(N * H * (x_isz + o_isz)
                           + (n_row_tiles if k_chunks > 1 else 1) * weight_bytes
                           + (Hk + H) * 4))

    vmem_need = _vmem_bytes(tile_m, H, tk, x_isz, w_isz, o_isz)
    vmem_limit = int(min(budget, max(32 * 1024 * 1024, int(1.35 * vmem_need))))

    def _call(single_buffer_consts):
        def spec(shape, index_map, invariant):
            if single_buffer_consts and invariant:
                return pl.BlockSpec(shape, index_map,
                                    pipeline_mode=pl.Buffered(buffer_count=1))
            return pl.BlockSpec(shape, index_map)

        w_inv = (k_chunks == 1)   # weights grid-invariant only when not chunked
        in_specs = [
            pl.BlockSpec((tile_m, H), lambda i, k: (i, 0)),      # x row tile
            spec((H, tk), lambda i, k: (0, k), w_inv),           # W1^T chunk
            spec((1, tk), lambda i, k: (0, k), w_inv),           # b1 chunk (f32)
            spec((tk, H), lambda i, k: (k, 0), w_inv),           # W2^T chunk
            spec((1, H), lambda i, k: (0, 0), True),             # b2 (f32)
        ]
        return pl.pallas_call(
            kernel,
            out_shape=jax.ShapeDtypeStruct((N, H), out_dtype),
            grid_spec=pltpu.PrefetchScalarGridSpec(
                num_scalar_prefetch=0,
                grid=grid,
                in_specs=in_specs,
                out_specs=pl.BlockSpec((tile_m, H), lambda i, k: (i, 0)),
                scratch_shapes=[pltpu.VMEM((tile_m, H), jnp.float32)],
            ),
            compiler_params=pltpu.CompilerParams(
                dimension_semantics=("parallel", "arbitrary"),
                vmem_limit_bytes=vmem_limit,
            ),
            cost_estimate=cost,
        )(x2d, w1t, b1r, w2t, b2r)

    try:
        out2d = _call(True)
    except Exception:
        # Only the pallas_call itself is retried (e.g. this build rejects
        # pipeline_mode=pl.Buffered(1)); accuracy checks live in the caller,
        # so numerical failures are never masked here.
        out2d = _call(False)

    return out2d.reshape(B, L, H)


def ffn_reference(x, w1, b1, w2, b2):
    """Pure-JAX reference matching PyTorch FFN.forward (eval mode)."""
    hp = jax.lax.Precision.HIGHEST
    h = jnp.einsum("blh,oh->blo", x, w1, precision=hp) + b1
    h = jnp.maximum(h, 0.0)
    return jnp.einsum("blh,oh->blo", h, w2, precision=hp) + b2


if __name__ == "__main__":
    B, L, H = 2, 8, 32  # batch, seq, hidden_units
    key = jax.random.PRNGKey(0)
    kx, k1, k2, k3, k4 = jax.random.split(key, 5)

    x = jax.random.normal(kx, (B, L, H), dtype=jnp.float32)

    # Deterministic "Conv1d(H, H, kernel_size=1)" parameters (out, in) + biases.
    bound = 1.0 / jnp.sqrt(H)
    w1 = jax.random.uniform(k1, (H, H), minval=-bound, maxval=bound, dtype=jnp.float32)
    b1 = jax.random.uniform(k2, (H,), minval=-bound, maxval=bound, dtype=jnp.float32)
    w2 = jax.random.uniform(k3, (H, H), minval=-bound, maxval=bound, dtype=jnp.float32)
    b2 = jax.random.uniform(k4, (H,), minval=-bound, maxval=bound, dtype=jnp.float32)

    ref = jax.block_until_ready(ffn_reference(x, w1, b1, w2, b2))

    # Default path: bf16 MXU operands, f32 accumulation.
    out_bf16 = jax.block_until_ready(ffn_pallas(x, w1, b1, w2, b2))
    assert out_bf16.shape == (B, L, H) and out_bf16.dtype == x.dtype
    if not jnp.allclose(out_bf16, ref, atol=2e-2, rtol=2e-2):
        raise AssertionError("pallas FFN (bf16 compute) mismatch vs reference")

    # f32 opt-out: tighter check against the high-precision reference.
    out_f32 = jax.block_until_ready(
        ffn_pallas(x, w1, b1, w2, b2, compute_dtype=jnp.float32))
    if not jnp.allclose(out_f32, ref, atol=5e-3, rtol=5e-3):
        raise AssertionError("pallas FFN (f32 compute) mismatch vs reference")

    print("KERNEL_OK")
</pallas_src>

<mosaic_0001>
module attributes {stable_mosaic.version = 11 : i64} {
  func.func @ffn_kernel(%arg0: i32, %arg1: i32, %arg2: memref<8x32xf32, #tpu.memory_space<vmem>>, %arg3: memref<32x32xbf16, #tpu.memory_space<vmem>>, %arg4: memref<1x32xf32, #tpu.memory_space<vmem>>, %arg5: memref<32x32xbf16, #tpu.memory_space<vmem>>, %arg6: memref<1x32xf32, #tpu.memory_space<vmem>>, %arg7: memref<8x32xf32, #tpu.memory_space<vmem>>, %arg8: memref<8x32xf32, #tpu.memory_space<vmem>>) attributes {dimension_semantics = [#tpu.dimension_semantics<parallel>, #tpu.dimension_semantics<arbitrary>], iteration_bounds = array<i64: 2, 1>, scalar_prefetch = 0 : i64, scratch_operands = 1 : i64, tpu.core_type = #tpu.core_type<tc>, window_params = [{transform_indices = @transform_0, window_bounds = array<i64: 8, 32>}, {pipeline_mode = #tpu.pipeline_mode<synchronous>, transform_indices = @transform_1, window_bounds = array<i64: 32, 32>}, {pipeline_mode = #tpu.pipeline_mode<synchronous>, transform_indices = @transform_2, window_bounds = array<i64: 1, 32>}, {pipeline_mode = #tpu.pipeline_mode<synchronous>, transform_indices = @transform_3, window_bounds = array<i64: 32, 32>}, {pipeline_mode = #tpu.pipeline_mode<synchronous>, transform_indices = @transform_4, window_bounds = array<i64: 1, 32>}, {transform_indices = @transform_5, window_bounds = array<i64: 8, 32>}]} {
    %c0_i32 = arith.constant 0 : i32
    %0 = arith.cmpi eq, %arg1, %c0_i32 : i32
    %1 = arith.extui %0 : i1 to i32
    %c0_i32_0 = arith.constant 0 : i32
    %2 = arith.cmpi ne, %1, %c0_i32_0 : i32
    scf.if %2 {
      %cst_16 = arith.constant 0.000000e+00 : f32
      %21 = vector.broadcast %cst_16 : f32 to vector<8x32xf32>
      %c0_17 = arith.constant 0 : index
      %c0_18 = arith.constant 0 : index
      %22 = vector.load %arg8[%c0_17, %c0_18] : memref<8x32xf32, #tpu.memory_space<vmem>>, vector<8x32xf32>
      tpu.vector_store %arg8[%c0_17, %c0_18], %21 {strides = array<i32>} : memref<8x32xf32, #tpu.memory_space<vmem>>, vector<8x32xf32>,
    } else {
    }
    %c0 = arith.constant 0 : index
    %c0_1 = arith.constant 0 : index
    %3 = vector.load %arg2[%c0, %c0_1] : memref<8x32xf32, #tpu.memory_space<vmem>>, vector<8x32xf32>
    %4 = arith.truncf %3 : vector<8x32xf32> to vector<8x32xbf16>
    %c0_2 = arith.constant 0 : index
    %c0_3 = arith.constant 0 : index
    %5 = vector.load %arg3[%c0_2, %c0_3] : memref<32x32xbf16, #tpu.memory_space<vmem>>, vector<32x32xbf16>
    %cst = arith.constant dense<0.000000e+00> : vector<8x32xf32>
    %6 = tpu.matmul %4, %5, %cst {dimension_numbers = #tpu.dot_dimension_numbers<[1], [0], [0], [1], [0, 0, 1, 1], [], []>} : vector<8x32xbf16>, vector<32x32xbf16>, vector<8x32xf32> -> vector<8x32xf32>
    %c0_4 = arith.constant 0 : index
    %c0_5 = arith.constant 0 : index
    %7 = vector.load %arg4[%c0_4, %c0_5] : memref<1x32xf32, #tpu.memory_space<vmem>>, vector<1x32xf32>
    %8 = vector.broadcast %7 : vector<1x32xf32> to vector<8x32xf32>
    %9 = arith.addf %6, %8 : vector<8x32xf32>
    %cst_6 = arith.constant 0.000000e+00 : f32
    %10 = vector.broadcast %cst_6 : f32 to vector<8x32xf32>
    %11 = arith.maximumf %9, %10 : vector<8x32xf32>
    %12 = arith.truncf %11 : vector<8x32xf32> to vector<8x32xbf16>
    %c0_7 = arith.constant 0 : index
    %c0_8 = arith.constant 0 : index
    %13 = vector.load %arg8[%c0_7, %c0_8] : memref<8x32xf32, #tpu.memory_space<vmem>>, vector<8x32xf32>
    %c0_9 = arith.constant 0 : index
    %c0_10 = arith.constant 0 : index
    %14 = vector.load %arg5[%c0_9, %c0_10] : memref<32x32xbf16, #tpu.memory_space<vmem>>, vector<32x32xbf16>
    %cst_11 = arith.constant dense<0.000000e+00> : vector<8x32xf32>
    %15 = tpu.matmul %12, %14, %cst_11 {dimension_numbers = #tpu.dot_dimension_numbers<[1], [0], [0], [1], [0, 0, 1, 1], [], []>} : vector<8x32xbf16>, vector<32x32xbf16>, vector<8x32xf32> -> vector<8x32xf32>
    %16 = arith.addf %13, %15 : vector<8x32xf32>
    %c0_12 = arith.constant 0 : index
    %c0_13 = arith.constant 0 : index
    %17 = vector.load %arg8[%c0_12, %c0_13] : memref<8x32xf32, #tpu.memory_space<vmem>>, vector<8x32xf32>
    tpu.vector_store %arg8[%c0_12, %c0_13], %16 {strides = array<i32>} : memref<8x32xf32, #tpu.memory_space<vmem>>, vector<8x32xf32>,
    %c0_i32_14 = arith.constant 0 : i32
    %18 = arith.cmpi eq, %arg1, %c0_i32_14 : i32
    %19 = arith.extui %18 : i1 to i32
    %c0_i32_15 = arith.constant 0 : i32
    %20 = arith.cmpi ne, %19, %c0_i32_15 : i32
    scf.if %20 {
      %c0_16 = arith.constant 0 : index
      %c0_17 = arith.constant 0 : index
      %21 = vector.load %arg8[%c0_16, %c0_17] : memref<8x32xf32, #tpu.memory_space<vmem>>, vector<8x32xf32>
      %c0_18 = arith.constant 0 : index
      %c0_19 = arith.constant 0 : index
      %22 = vector.load %arg6[%c0_18, %c0_19] : memref<1x32xf32, #tpu.memory_space<vmem>>, vector<1x32xf32>
      %23 = vector.broadcast %22 : vector<1x32xf32> to vector<8x32xf32>
      %24 = arith.addf %21, %23 : vector<8x32xf32>
      %c0_20 = arith.constant 0 : index
      %c0_21 = arith.constant 0 : index
      %25 = vector.load %arg7[%c0_20, %c0_21] : memref<8x32xf32, #tpu.memory_space<vmem>>, vector<8x32xf32>
      tpu.vector_store %arg7[%c0_20, %c0_21], %24 {strides = array<i32>} : memref<8x32xf32, #tpu.memory_space<vmem>>, vector<8x32xf32>,
    } else {
    }
    return
  }
  func.func @transform_0(%arg0: i32, %arg1: i32) -> (i32, i32) {
    %c0_i32 = arith.constant 0 : i32
    %c0_i32_0 = arith.constant 0 : i32
    return %arg0, %c0_i32 : i32, i32
  }
  func.func @transform_1(%arg0: i32, %arg1: i32) -> (i32, i32) {
    %c0_i32 = arith.constant 0 : i32
    %c0_i32_0 = arith.constant 0 : i32
    return %c0_i32, %arg1 : i32, i32
  }
  func.func @transform_2(%arg0: i32, %arg1: i32) -> (i32, i32) {
    %c0_i32 = arith.constant 0 : i32
    %c0_i32_0 = arith.constant 0 : i32
    return %c0_i32, %arg1 : i32, i32
  }
  func.func @transform_3(%arg0: i32, %arg1: i32) -> (i32, i32) {
    %c0_i32 = arith.constant 0 : i32
    %c0_i32_0 = arith.constant 0 : i32
    return %arg1, %c0_i32 : i32, i32
  }
  func.func @transform_4(%arg0: i32, %arg1: i32) -> (i32, i32) {
    %c0_i32 = arith.constant 0 : i32
    %c0_i32_0 = arith.constant 0 : i32
    %c0_i32_1 = arith.constant 0 : i32
    return %c0_i32, %c0_i32_0 : i32, i32
  }
  func.func @transform_5(%arg0: i32, %arg1: i32) -> (i32, i32) {
    %c0_i32 = arith.constant 0 : i32
    %c0_i32_0 = arith.constant 0 : i32
    return %arg0, %c0_i32 : i32, i32
  }
}

module attributes {stable_mosaic.version = 11 : i64} {
  func.func @ffn_kernel(%arg0: i32, %arg1: i32, %arg2: memref<8x32xf32, #tpu.memory_space<vmem>>, %arg3: memref<32x32xbf16, #tpu.memory_space<vmem>>, %arg4: memref<1x32xf32, #tpu.memory_space<vmem>>, %arg5: memref<32x32xbf16, #tpu.memory_space<vmem>>, %arg6: memref<1x32xf32, #tpu.memory_space<vmem>>, %arg7: memref<8x32xf32, #tpu.memory_space<vmem>>, %arg8: memref<8x32xf32, #tpu.memory_space<vmem>>) attributes {dimension_semantics = [#tpu.dimension_semantics<parallel>, #tpu.dimension_semantics<arbitrary>], iteration_bounds = array<i64: 2, 1>, scalar_prefetch = 0 : i64, scratch_operands = 1 : i64, tpu.core_type = #tpu.core_type<tc>, window_params = [{transform_indices = @transform_0, window_bounds = array<i64: 8, 32>}, {transform_indices = @transform_1, window_bounds = array<i64: 32, 32>}, {transform_indices = @transform_2, window_bounds = array<i64: 1, 32>}, {transform_indices = @transform_3, window_bounds = array<i64: 32, 32>}, {pipeline_mode = #tpu.pipeline_mode<synchronous>, transform_indices = @transform_4, window_bounds = array<i64: 1, 32>}, {transform_indices = @transform_5, window_bounds = array<i64: 8, 32>}]} {
    %c0_i32 = arith.constant 0 : i32
    %0 = arith.cmpi eq, %arg1, %c0_i32 : i32
    %1 = arith.extui %0 : i1 to i32
    %c0_i32_0 = arith.constant 0 : i32
    %2 = arith.cmpi ne, %1, %c0_i32_0 : i32
    scf.if %2 {
      %cst_16 = arith.constant 0.000000e+00 : f32
      %21 = vector.broadcast %cst_16 : f32 to vector<8x32xf32>
      %c0_17 = arith.constant 0 : index
      %c0_18 = arith.constant 0 : index
      %22 = vector.load %arg8[%c0_17, %c0_18] : memref<8x32xf32, #tpu.memory_space<vmem>>, vector<8x32xf32>
      tpu.vector_store %arg8[%c0_17, %c0_18], %21 {strides = array<i32>} : memref<8x32xf32, #tpu.memory_space<vmem>>, vector<8x32xf32>,
    } else {
    }
    %c0 = arith.constant 0 : index
    %c0_1 = arith.constant 0 : index
    %3 = vector.load %arg2[%c0, %c0_1] : memref<8x32xf32, #tpu.memory_space<vmem>>, vector<8x32xf32>
    %4 = arith.truncf %3 : vector<8x32xf32> to vector<8x32xbf16>
    %c0_2 = arith.constant 0 : index
    %c0_3 = arith.constant 0 : index
    %5 = vector.load %arg3[%c0_2, %c0_3] : memref<32x32xbf16, #tpu.memory_space<vmem>>, vector<32x32xbf16>
    %cst = arith.constant dense<0.000000e+00> : vector<8x32xf32>
    %6 = tpu.matmul %4, %5, %cst {dimension_numbers = #tpu.dot_dimension_numbers<[1], [0], [0], [1], [0, 0, 1, 1], [], []>} : vector<8x32xbf16>, vector<32x32xbf16>, vector<8x32xf32> -> vector<8x32xf32>
    %c0_4 = arith.constant 0 : index
    %c0_5 = arith.constant 0 : index
    %7 = vector.load %arg4[%c0_4, %c0_5] : memref<1x32xf32, #tpu.memory_space<vmem>>, vector<1x32xf32>
    %8 = vector.broadcast %7 : vector<1x32xf32> to vector<8x32xf32>
    %9 = arith.addf %6, %8 : vector<8x32xf32>
    %cst_6 = arith.constant 0.000000e+00 : f32
    %10 = vector.broadcast %cst_6 : f32 to vector<8x32xf32>
    %11 = arith.maximumf %9, %10 : vector<8x32xf32>
    %12 = arith.truncf %11 : vector<8x32xf32> to vector<8x32xbf16>
    %c0_7 = arith.constant 0 : index
    %c0_8 = arith.constant 0 : index
    %13 = vector.load %arg8[%c0_7, %c0_8] : memref<8x32xf32, #tpu.memory_space<vmem>>, vector<8x32xf32>
    %c0_9 = arith.constant 0 : index
    %c0_10 = arith.constant 0 : index
    %14 = vector.load %arg5[%c0_9, %c0_10] : memref<32x32xbf16, #tpu.memory_space<vmem>>, vector<32x32xbf16>
    %cst_11 = arith.constant dense<0.000000e+00> : vector<8x32xf32>
    %15 = tpu.matmul %12, %14, %cst_11 {dimension_numbers = #tpu.dot_dimension_numbers<[1], [0], [0], [1], [0, 0, 1, 1], [], []>} : vector<8x32xbf16>, vector<32x32xbf16>, vector<8x32xf32> -> vector<8x32xf32>
    %16 = arith.addf %13, %15 : vector<8x32xf32>
    %c0_12 = arith.constant 0 : index
    %c0_13 = arith.constant 0 : index
    %17 = vector.load %arg8[%c0_12, %c0_13] : memref<8x32xf32, #tpu.memory_space<vmem>>, vector<8x32xf32>
    tpu.vector_store %arg8[%c0_12, %c0_13], %16 {strides = array<i32>} : memref<8x32xf32, #tpu.memory_space<vmem>>, vector<8x32xf32>,
    %c0_i32_14 = arith.constant 0 : i32
    %18 = arith.cmpi eq, %arg1, %c0_i32_14 : i32
    %19 = arith.extui %18 : i1 to i32
    %c0_i32_15 = arith.constant 0 : i32
    %20 = arith.cmpi ne, %19, %c0_i32_15 : i32
    scf.if %20 {
      %c0_16 = arith.constant 0 : index
      %c0_17 = arith.constant 0 : index
      %21 = vector.load %arg8[%c0_16, %c0_17] : memref<8x32xf32, #tpu.memory_space<vmem>>, vector<8x32xf32>
      %c0_18 = arith.constant 0 : index
      %c0_19 = arith.constant 0 : index
      %22 = vector.load %arg6[%c0_18, %c0_19] : memref<1x32xf32, #tpu.memory_space<vmem>>, vector<1x32xf32>
      %23 = vector.broadcast %22 : vector<1x32xf32> to vector<8x32xf32>
      %24 = arith.addf %21, %23 : vector<8x32xf32>
      %c0_20 = arith.constant 0 : index
      %c0_21 = arith.constant 0 : index
      %25 = vector.load %arg7[%c0_20, %c0_21] : memref<8x32xf32, #tpu.memory_space<vmem>>, vector<8x32xf32>
      tpu.vector_store %arg7[%c0_20, %c0_21], %24 {strides = array<i32>} : memref<8x32xf32, #tpu.memory_space<vmem>>, vector<8x32xf32>,
    } else {
    }
    return
  }
  func.func @transform_0(%arg0: i32, %arg1: i32) -> (i32, i32) {
    %c0_i32 = arith.constant 0 : i32
    %c0_i32_0 = arith.constant 0 : i32
    return %arg0, %c0_i32 : i32, i32
  }
  func.func @transform_1(%arg0: i32, %arg1: i32) -> (i32, i32) {
    %c0_i32 = arith.constant 0 : i32
    %c0_i32_0 = arith.constant 0 : i32
    return %c0_i32, %arg1 : i32, i32
  }
  func.func @transform_2(%arg0: i32, %arg1: i32) -> (i32, i32) {
    %c0_i32 = arith.constant 0 : i32
    %c0_i32_0 = arith.constant 0 : i32
    return %c0_i32, %arg1 : i32, i32
  }
  func.func @transform_3(%arg0: i32, %arg1: i32) -> (i32, i32) {
    %c0_i32 = arith.constant 0 : i32
    %c0_i32_0 = arith.constant 0 : i32
    return %arg1, %c0_i32 : i32, i32
  }
  func.func @transform_4(%arg0: i32, %arg1: i32) -> (i32, i32) {
    %c0_i32 = arith.constant 0 : i32
    %c0_i32_0 = arith.constant 0 : i32
    %c0_i32_1 = arith.constant 0 : i32
    return %c0_i32, %c0_i32_0 : i32, i32
  }
  func.func @transform_5(%arg0: i32, %arg1: i32) -> (i32, i32) {
    %c0_i32 = arith.constant 0 : i32
    %c0_i32_0 = arith.constant 0 : i32
    return %arg0, %c0_i32 : i32, i32
  }
}

</mosaic_0001>

<bundles_post_ra>
// kernel: tpu_custom_call.1
= control target key start
LH: loop header
LB: loop body
LE: loop exit
PB: predicated region body
PF: predicated region fallthrough
CT: control target
= control target key end

     0   :  { %10 = vsyncpa [#allocation4], 0  ;;  %s1207_s0 = inlined_call_operand.hbm [shape: f32[16,32], index: 0, kind: input, shape index: {}]   ;;  %s1208_s1 = inlined_call_operand.hbm [shape: bf16[32,32], index: 1, kind: input, shape index: {}]   ;;  %s1209_s2 = inlined_call_operand.vmem [shape: f32[1,32], index: 2, kind: input, shape index: {}]   ;;  %s1210_s3 = inlined_call_operand.hbm [shape: bf16[32,32], index: 3, kind: input, shape index: {}]   ;;  %s1211_s4 = inlined_call_operand.vmem [shape: f32[1,32], index: 4, kind: input, shape index: {}]   ;;  %s1212_s5 = inlined_call_operand.hbm [shape: f32[16,32], index: 5, kind: output, shape index: {}]  }
   0x1   :  { %12 = vsyncpa [#allocation4 + $0x1], 0 }
   0x2   :  { %13 = vsyncpa [#allocation7], 0 }
   0x3   :  { %14 = vsyncpa [#allocation5], 0 }
   0x4   :  { %16 = vsyncpa [#allocation5 + $0x1], 0  ;;  %s942_s18 = smov 0   ;;  %s944_s19 = smov 0  }
   0x5   :  { %s946_s20 = smov 0   ;;  %s948_s21 = smov 0  }
   0x6   :  { %s950_s22 = smov 0   ;;  %s952_s23 = smov 0  }
   0x7 LB: > { %s591_s24 = sadd.s32 4294967295, %s902_s23   ;;  %s592_s25 = sadd.s32 4294967294, %s902_s23   ;;  %s902_s23 = sphi %s952_s23, %s22_s23   ;;  %s898_s22 = sphi %s950_s22, %s1234_s22   ;;  %s894_s21 = sphi %s948_s21, %s1233_s21   ;;  %s890_s20 = sphi %s946_s20, %s1232_s20   ;;  %s886_s19 = sphi %s944_s19, %s1231_s19   ;;  %s882_s18 = sphi %s942_s18, %s1230_s18  }
   0x8   : > { %p54_p0 = scmp.ne.s32.totalorder %s886_s19, %s882_s18  ;;  %p976_p1 = scmp.eq.s32.totalorder %s591_s24, 0 }
   0x9   : > { %p980_p2 = scmp.eq.s32.totalorder %s591_s24, 1  ;;  %p183_p3 = scmp.eq.s32.totalorder %s592_s25, 1 }
   0xa   : > { %s1217_s26 = scalar_select %p976_p1, 1, 0 }
   0xb   : > { %p986_p4 = por %p976_p1, %p54_p0  ;;  %p593_p5 = scmp.ge.s32.totalorder %s902_s23, 1 }
   0xc   : > { %p991_p6 = por %p183_p3, %p54_p0  ;;  %p190_p7 = scmp.lt.s32.totalorder %s902_s23, 3 }
   0xd   : > { %s1219_s28 = scalar_select %p986_p4, 1, 0 }
   0xe   : > { %s1220_s29 = scalar_select %p991_p6, 1, 0 }
   0xf   : > { %p996_p8 = pnand %p593_p5, %p190_p7  ;;  %s904_s6 = smov [#allocation6]  }
  0x10   : > { %s204_s7 = sshll.u32 %s904_s6, 4  ;;  %s905_s9 = smov [#allocation8]   ;;  %s1000_s7 = int_to_ptr.vmem [resolvable:$true] %s204_s7 }
  0x11   : > { %p651_p9 = pneg %p996_p8  ;;  %s226_s10 = sshll.u32 %s905_s9, 4  ;;  %s1011_s10 = int_to_ptr.vmem [resolvable:$true] %s226_s10 }
  0x12   : > { %s730_s13 = scalar_lea.hbm %s1208_s1, 256 }
  0x13   : > { %p1007_p11 = pnand %p651_p9, %p976_p1  ;;  %p731_p12 = scmp.ne.s32.totalorder %s1208_s1, %s730_s13 }
  0x14   : > { %p737_p5 = scmp.lt.u32.totalorder %s730_s13, %s1208_s1 }
  0x15   : > { %p732_p13 = pneg %p1007_p11 }
  0x17   : > { %p733_p0 = pnand %p732_p13, %p731_p12 }
  0x19   : > { %p734_p3 = pneg %p733_p0 }
  0x1b   : > { %p739_p7 = pnand %p737_p5, %p734_p3 }
  0x1d   : > { %742 = shalt.err (!%p739_p7)
}
  0x1e   : > { %s743_s24 = scalar_lea.vmem %s1000_s7, 256  ;;  %p751_p1 = scmp.lt.s32.totalorder %s1000_s7, %s1000_s7 }
  0x1f   : > { %p744_p9 = scmp.ne.s32.totalorder %s1000_s7, %s743_s24  ;;  %p752_p12 = scmp.lt.s32.totalorder %s743_s24, %s743_s24 }
  0x21   : > { %p746_p10 = pnand %p744_p9, %p732_p13  ;;  %p753_p0 = por %p752_p12, %p751_p1 }
  0x23   : > { %p747_p6 = pneg %p746_p10 }
  0x25   : > { %p754_p4 = pnand %p753_p0, %p747_p6 }
  0x27   : > { %757 = shalt.err (!%p754_p4)
}
  0x28   : > { %s906_s25 = smov 64   ;;  %s907_s6 = smov 4  }
  0x29   : > { %654 = dma.hbm_to_vmem [thread:$0]  (!%p1007_p11), %s1208_s1, 256, %s1000_s7, [#allocation7], %s906_s25, %s906_s25, %s907_s6  }
  0x2a   : > { %s758_s14 = scalar_lea.hbm %s1210_s3, 256 }
  0x2b   : > { %p759_p1 = scmp.ne.s32.totalorder %s1210_s3, %s758_s14  ;;  %p765_p10 = scmp.lt.u32.totalorder %s758_s14, %s1210_s3 }
  0x2d   : > { %p761_p4 = pnand %p759_p1, %p732_p13 }
  0x2f   : > { %p762_p6 = pneg %p761_p4 }
  0x31   : > { %p767_p3 = pnand %p765_p10, %p762_p6 }
  0x33   : > { %770 = shalt.err (!%p767_p3)
}
  0x34   : > { %s771_s7 = scalar_lea.vmem %s1011_s10, 256  ;;  %p779_p12 = scmp.lt.s32.totalorder %s1011_s10, %s1011_s10 }
  0x35   : > { %p772_p5 = scmp.ne.s32.totalorder %s1011_s10, %s771_s7  ;;  %p780_p0 = scmp.lt.s32.totalorder %s771_s7, %s771_s7 }
  0x37   : > { %p774_p7 = pnand %p772_p5, %p732_p13  ;;  %p781_p1 = por %p780_p0, %p779_p12 }
  0x39   : > { %p775_p9 = pneg %p774_p7 }
  0x3b   : > { %p782_p4 = pnand %p781_p1, %p775_p9 }
  0x3d   : > { %785 = shalt.err (!%p782_p4)
}
  0x3e   : > { %657 = dma.hbm_to_vmem [thread:$0]  (!%p1007_p11), %s1210_s3, 256, %s1011_s10, [#allocation7], %s906_s25, %s906_s25, %s907_s6  }
  0x3f   : > { %s34_s12 = sadd.s32 1, %s898_s22  ;;  %s41_s13 = sadd.s32 1, %s890_s20 }
  0x40   : > { %p36_p13 = scmp.ge.s32.totalorder %s34_s12, 2  ;;  %p48_p6 = scmp.ne.s32.totalorder %s890_s20, %s886_s19 }
  0x41   : > { %p49_p10 = scmp.eq.s32.totalorder %s902_s23, 0  ;;  %p668_p3 = scmp.lt.s32.totalorder %s902_s23, 2 }
  0x42   : > { %s1236_s12 = smov (%p36_p13, %s34_s12), 0  ;;  %p1075_p7 = por %p980_p2, %p48_p6 }
  0x43   : > { %p50_p5 = por %p49_p10, %p48_p6  ;;  %s38_s14 = ssub.s32 %s898_s22, %s1236_s12 }
  0x44   : > { %s1223_s8 = scalar_select %p1075_p7, 1, 0 }
  0x45   : > { %s243_s15 = sand.u32 1, %s890_s20   ;;  %p39_p9 = scmp.eq.s32.totalorder %s38_s14, 0 }
  0x46   : > { %s598_s10 = sshll.u32 %s243_s15, 3  ;;  %s599_s25 = sshll.u32 %s898_s22, 7 }
  0x47   : > { %s1084_s6 = scalar_select %p39_p9, %s890_s20, %s41_s13  }
  0x48   : > { %s1089_s24 = scalar_lea.hbm %s1207_s0, %s599_s25  ;;  %s247_s27 = scalar_lea.vmem [#allocation3], %s598_s10 }
  0x49   : > { %s254_s7 = sshll.u32 %s247_s27, 4  ;;  %p1093_p2 = pnand %p668_p3, %p50_p5  ;;  %s1097_s7 = int_to_ptr.vmem [resolvable:$true] %s254_s7 }
  0x4a   : > { %s244_s11 = scalar_lea.sflag [#allocation4], %s243_s15  ;;  %s786_s13 = scalar_lea.hbm %s1089_s24, 128 }
  0x4b   : > { %p787_p11 = scmp.ne.s32.totalorder %s1089_s24, %s786_s13  ;;  %p788_p12 = pneg %p1093_p2 }
  0x4c   : > { %s791_s25 = scalar_lea.hbm %s1207_s0, 256  ;;  %p792_p4 = scmp.lt.u32.totalorder %s1089_s24, %s1207_s0 }
  0x4d   : > { %p789_p0 = pnand %p788_p12, %p787_p11  ;;  %p793_p13 = scmp.lt.u32.totalorder %s791_s25, %s786_s13 }
  0x4e   : > { %p795_p10 = scmp.lt.u32.totalorder %s786_s13, %s1089_s24 }
  0x4f   : > { %p790_p1 = pneg %p789_p0  ;;  %p794_p6 = por %p793_p13, %p792_p4 }
  0x51   : > { %p796_p3 = por %p795_p10, %p794_p6 }
  0x53   : > { %p797_p5 = pnand %p796_p3, %p790_p1 }
  0x55   : > { %800 = shalt.err (!%p797_p5)
}
  0x56   : > { %s801_s15 = scalar_lea.vmem %s1097_s7, 128  ;;  %s908_s27 = smov [#allocation3]  }
  0x57   : > { %p802_p9 = scmp.ne.s32.totalorder %s1097_s7, %s801_s15  ;;  %s806_s14 = sshll.u32 %s908_s27, 4  ;;  %s807_s14 = int_to_ptr.vmem [resolvable:$false] %s806_s14 }
  0x58   : > { %s808_s10 = scalar_lea.vmem %s807_s14, 256  ;;  %p809_p7 = scmp.lt.s32.totalorder %s1097_s7, %s807_s14 }
  0x59   : > { %p804_p11 = pnand %p802_p9, %p788_p12  ;;  %p810_p4 = scmp.lt.s32.totalorder %s808_s10, %s801_s15 }
  0x5b   : > { %p805_p0 = pneg %p804_p11  ;;  %p811_p13 = por %p810_p4, %p809_p7 }
  0x5d   : > { %p812_p6 = pnand %p811_p13, %p805_p0 }
  0x5f   : > { %815 = shalt.err (!%p812_p6)
}
  0x60   : > { %661 = dma.hbm_to_vmem [thread:$0]  (!%p1093_p2), %s1089_s24, 128, %s1097_s7, %s244_s11  }
  0x61   : > { %263 = sbr.rel (%p996_p8) target bundleno = 574 (0x23e), region = 40  ;;  %s1127_s13 = sand.u32 (!%p996_p8), 1, %s886_s19  }
  0x62   : > { %s601_s25 = sshll.u32 (!%p996_p8), %s1127_s13, 3  ;;  %s266_s16 = scalar_lea.sflag (!%p996_p8), [#allocation4], %s1127_s13 }
  0x63   : > { %s269_s17 = scalar_lea.vmem (!%p996_p8), [#allocation3], %s601_s25  ;;  %p1225_p7 = scmp.ne.s32.totalorder (!%p996_p8), %s1219_s28, 0 }
  0x68   : > { %869 = dma.done.wait (%p1225_p7), %s266_s16, 128  }
  0x69   : > { %871 = vsyncadd (%p1225_p7), %s266_s16, 4294967168  ;;  %p1226_p2 = scmp.ne.s32.totalorder %s1217_s26, 0 }
  0x6b   : > { %873 = dma.done.wait (%p1226_p2), [#allocation7], 512  }
  0x6c   : > { %875 = vsyncadd (%p1226_p2), [#allocation7], 4294966784  ;;  %vm316_vm0 = vcmask 261120   ;;  %v909_v0 = vmov 0.0   ;;  %vm910_vm1 = vmmov 0   ;;  %v726_v1 = vld [vmem:[#allocation6] sm:$0xff]  }
  0x6d   : > { %623 = vmatprep.subr.bf16.mxu0 %v909_v0  ;;  %627 = vmatprep.mubr.msk.bf16.mxu0 %vm910_vm1, %v909_v0  ;;  %317 = vst.msk [vmem:[#allocation2] sm:$0xff] %vm316_vm0, %v909_v0  ;;  %v727_v2 = vld [vmem:[#allocation6 + $0x8] sm:$0xff]   ;;  %v318_v3 = vld [vmem:[%s269_s17] sm:$0xff]  ;;  %s614_s7 = sshll.u32 %s894_s21, 7  ;;  %s306_s9 = scalar_lea.vmem [#allocation9], %s601_s25 }
  0x6e   : > { %631 = vmatprep.subr.bf16.mxu1 %v909_v0  ;;  %635 = vmatprep.mubr.msk.bf16.mxu1 %vm910_vm1, %v909_v0  ;;  %v319_v4 = vpack.c.bf16 %v318_v3, %v318_v3  ;;  %v728_v5 = vld [vmem:[#allocation8] sm:$0xff]   ;;  %v729_v6 = vld [vmem:[#allocation8 + $0x8] sm:$0xff]   ;;  %v605_v7 = vld [vmem:[%s1209_s2] ss:$0 sm:$0xff]  ;;  %s478_s11 = sshll.u32 %s306_s9, 4  ;;  %s1157_s14 = scalar_lea.hbm %s1212_s5, %s614_s7  ;;  %s1159_s11 = int_to_ptr.vmem [resolvable:$true] %s478_s11 }
  0x6f   : > { %624 = vmatpush3.bf16.msra.mxu0 %v726_v1  ;;  %632 = vmatpush3.bf16.msra.mxu1 %v728_v5  ;;  %v612_v21 = vld [vmem:[%s1211_s4] ss:$0 sm:$0xff]  ;;  %s465_s10 = scalar_lea.sflag [#allocation5], %s1127_s13  ;;  %s816_s16 = scalar_lea.vmem %s1159_s11, 128 }
  0x70   : > { %625 = vmatprep.subr.bf16.mxu0 %v909_v0  ;;  %633 = vmatprep.subr.bf16.mxu1 %v909_v0  ;;  %p817_p8 = scmp.ne.s32.totalorder %s1159_s11, %s816_s16  ;;  %p1227_p12 = scmp.ne.s32.totalorder %s1223_s8, 0 }
  0x71   : > { %s911_s21 = smov [#allocation9]  }
  0x72   : > { %p818_p1 = pnand %p817_p8, %p1227_p12  ;;  %s820_s25 = sshll.u32 %s911_s21, 4  ;;  %s821_s25 = int_to_ptr.vmem [resolvable:$false] %s820_s25 }
  0x73   : > { %626 = vmatpush3.bf16.msra.mxu0 %v727_v2  ;;  %634 = vmatpush3.bf16.msra.mxu1 %v729_v6  ;;  %s822_s17 = scalar_lea.vmem %s821_s25, 256  ;;  %p823_p3 = scmp.lt.s32.totalorder %s1159_s11, %s821_s25 }
  0x74   : > { %v389_v15 = vld [vmem:[#allocation2] sm:$0xff]  ;;  %p819_p10 = pneg %p818_p1  ;;  %p824_p5 = scmp.lt.s32.totalorder %s822_s17, %s816_s16 }
  0x76   : > { %628 = vmatmul.mubr.msk.bf16.vlgmr.msra.gmra.mrb[0].mxu0 %vm316_vm0, %v319_v4  ;;  %p825_p9 = por %p824_p5, %p823_p3 }
  0x78   : > { %p826_p11 = pnand %p825_p9, %p819_p10 }
 0x149   : > { %v381_v8 = vpop.f32.mrb[0].mxu0 }
 0x14a   : > { %v382_v9 = vadd.f32 %v605_v7, %v381_v8  ;;  %v629_v10 = vpop.f32.mrb[1].mxu0 }
 0x14b   : > { %v384_v11 = vpop.f32.mrb[2].mxu0 }
 0x14c   : > { %v387_v12 = vmax.f32 %v382_v9, 0.0  ;;  %v630_v13 = vpop.f32.mrb[3].mxu0 }
 0x14e   : > { %v388_v14 = vpack.c.bf16 %v387_v12, %v387_v12 }
 0x150   : > { %636 = vmatmul.mubr.msk.bf16.vlgmr.msra.gmra.mrb[0].mxu1 %vm316_vm0, %v388_v14 }
 0x223   : > { %v443_v16 = vpop.f32.mrb[0].mxu1 }
 0x224   : > { %v449_v17 = vadd.f32 %v443_v16, %v389_v15  ;;  %v637_v18 = vpop.f32.mrb[1].mxu1 }
 0x225   : > { %v446_v19 = vpop.f32.mrb[2].mxu1 }
 0x226   : > { %450 = vst.msk [vmem:[#allocation2] sm:$0xff] %vm316_vm0, %v449_v17  ;;  %v638_v20 = vpop.f32.mrb[3].mxu1 }
 0x22d   : > { %v454_v22 = vld [vmem:[#allocation2] sm:$0xff] }
 0x22e   : > { %v462_v23 = vadd.f32 %v612_v21, %v454_v22 }
 0x230   : > { %463 = vst.msk [vmem:[%s306_s9] sm:$0xff] %vm316_vm0, %v462_v23 }
 0x231   : > { %829 = shalt.err (!%p826_p11)
}
 0x232   : > { %s830_s13 = scalar_lea.hbm %s1157_s14, 128  ;;  %s834_s30 = scalar_lea.hbm %s1212_s5, 256 }
 0x233   : > { %p831_p0 = scmp.ne.s32.totalorder %s1157_s14, %s830_s13  ;;  %p835_p6 = scmp.lt.u32.totalorder %s1157_s14, %s1212_s5 }
 0x234   : > { %p836_p7 = scmp.lt.u32.totalorder %s834_s30, %s830_s13  ;;  %p838_p8 = scmp.lt.u32.totalorder %s830_s13, %s1157_s14 }
 0x235   : > { %p832_p4 = pnand %p831_p0, %p1227_p12 }
 0x236   : > { %p837_p2 = por %p836_p7, %p835_p6 }
 0x237   : > { %p833_p13 = pneg %p832_p4 }
 0x238   : > { %p839_p1 = por %p838_p8, %p837_p2 }
 0x23a   : > { %p840_p10 = pnand %p839_p1, %p833_p13 }
 0x23c   : > { %843 = shalt.err (!%p840_p10)
}
 0x23d   : > { %649 = dma.vmem_to_hbm [thread:$0]  (%p1227_p12), %s1159_s11, 128, %s1157_s14, %s465_s10  }
 0x23e PF: > { %s490_s9 = sand.u32 1, %s882_s18   ;;  %p1228_p3 = scmp.ne.s32.totalorder %s1220_s29, 0 }
 0x23f   : > { %p1229_p5 = scmp.ge.s32.totalorder %s902_s23, 2  ;;  %s491_s15 = scalar_lea.sflag [#allocation5], %s490_s9 }
 0x241   : > { %p663_p9 = pnand %p1229_p5, %p1228_p3 }
 0x243   : > { %877 = dma.done.wait (!%p663_p9), %s491_s15, 128  }
 0x244   : > { %879 = vsyncadd (!%p663_p9), %s491_s15, 4294967168  ;;  %s22_s23 = sadd.s32 1, %s902_s23   ;;  %s1230_s18 = smov %s886_s19 }
 0x245   : > { %p19_p11 = scmp.ge.s32.totalorder %s22_s23, 4   ;;  %s1231_s19 = smov %s890_s20 }
 0x246   : > { %s1232_s20 = smov %s1084_s6  ;;  %s1233_s21 = smov %s898_s22 }
 0x247   : > { %s1234_s22 = smov %s1236_s12  ;;  %21 = sbr.rel (!%p19_p11) target bundleno = 7 (0x7), region = 106 }
 0x24e   :  { %496 = vsyncpa [#allocation4], 1 }
 0x24f   :  { %498 = vsyncpa [#allocation4 + $0x1], 1 }
 0x250   :  { %499 = vsyncpa [#allocation7], 1 }
 0x251   :  { %500 = vsyncpa [#allocation5], 1 }
 0x252   :  { %502 = vsyncpa [#allocation5 + $0x1], 1 }

// kernel: tpu_custom_call.1
= control target key start
LH: loop header
LB: loop body
LE: loop exit
PB: predicated region body
PF: predicated region fallthrough
CT: control target
= control target key end

     0   :  { %10 = vsyncpa [#allocation4], 0  ;;  %s1207_s0 = inlined_call_operand.hbm [shape: f32[16,32], index: 0, kind: input, shape index: {}]   ;;  %s1208_s1 = inlined_call_operand.hbm [shape: bf16[32,32], index: 1, kind: input, shape index: {}]   ;;  %s1209_s2 = inlined_call_operand.vmem [shape: f32[1,32], index: 2, kind: input, shape index: {}]   ;;  %s1210_s3 = inlined_call_operand.hbm [shape: bf16[32,32], index: 3, kind: input, shape index: {}]   ;;  %s1211_s4 = inlined_call_operand.vmem [shape: f32[1,32], index: 4, kind: input, shape index: {}]   ;;  %s1212_s5 = inlined_call_operand.hbm [shape: f32[16,32], index: 5, kind: output, shape index: {}]  }
   0x1   :  { %12 = vsyncpa [#allocation4 + $0x1], 0 }
   0x2   :  { %13 = vsyncpa [#allocation7], 0 }
   0x3   :  { %14 = vsyncpa [#allocation5], 0 }
   0x4   :  { %16 = vsyncpa [#allocation5 + $0x1], 0  ;;  %s942_s18 = smov 0   ;;  %s944_s19 = smov 0  }
   0x5   :  { %s946_s20 = smov 0   ;;  %s948_s21 = smov 0  }
   0x6   :  { %s950_s22 = smov 0   ;;  %s952_s23 = smov 0  }
   0x7 LB: > { %s591_s24 = sadd.s32 4294967295, %s902_s23   ;;  %s592_s25 = sadd.s32 4294967294, %s902_s23   ;;  %s902_s23 = sphi %s952_s23, %s22_s23   ;;  %s898_s22 = sphi %s950_s22, %s1234_s22   ;;  %s894_s21 = sphi %s948_s21, %s1233_s21   ;;  %s890_s20 = sphi %s946_s20, %s1232_s20   ;;  %s886_s19 = sphi %s944_s19, %s1231_s19   ;;  %s882_s18 = sphi %s942_s18, %s1230_s18  }
   0x8   : > { %p54_p0 = scmp.ne.s32.totalorder %s886_s19, %s882_s18  ;;  %p976_p1 = scmp.eq.s32.totalorder %s591_s24, 0 }
   0x9   : > { %p980_p2 = scmp.eq.s32.totalorder %s591_s24, 1  ;;  %p183_p3 = scmp.eq.s32.totalorder %s592_s25, 1 }
   0xa   : > { %s1217_s26 = scalar_select %p976_p1, 1, 0 }
   0xb   : > { %p986_p4 = por %p976_p1, %p54_p0  ;;  %p593_p5 = scmp.ge.s32.totalorder %s902_s23, 1 }
   0xc   : > { %p991_p6 = por %p183_p3, %p54_p0  ;;  %p190_p7 = scmp.lt.s32.totalorder %s902_s23, 3 }
   0xd   : > { %s1219_s28 = scalar_select %p986_p4, 1, 0 }
   0xe   : > { %s1220_s29 = scalar_select %p991_p6, 1, 0 }
   0xf   : > { %p996_p8 = pnand %p593_p5, %p190_p7  ;;  %s904_s6 = smov [#allocation6]  }
  0x10   : > { %s204_s7 = sshll.u32 %s904_s6, 4  ;;  %s905_s9 = smov [#allocation8]   ;;  %s1000_s7 = int_to_ptr.vmem [resolvable:$true] %s204_s7 }
  0x11   : > { %p651_p9 = pneg %p996_p8  ;;  %s226_s10 = sshll.u32 %s905_s9, 4  ;;  %s1011_s10 = int_to_ptr.vmem [resolvable:$true] %s226_s10 }
  0x12   : > { %s730_s13 = scalar_lea.hbm %s1208_s1, 256 }
  0x13   : > { %p1007_p11 = pnand %p651_p9, %p976_p1  ;;  %p731_p12 = scmp.ne.s32.totalorder %s1208_s1, %s730_s13 }
  0x14   : > { %p737_p5 = scmp.lt.u32.totalorder %s730_s13, %s1208_s1 }
  0x15   : > { %p732_p13 = pneg %p1007_p11 }
  0x17   : > { %p733_p0 = pnand %p732_p13, %p731_p12 }
  0x19   : > { %p734_p3 = pneg %p733_p0 }
  0x1b   : > { %p739_p7 = pnand %p737_p5, %p734_p3 }
  0x1d   : > { %742 = shalt.err (!%p739_p7)
}
  0x1e   : > { %s743_s24 = scalar_lea.vmem %s1000_s7, 256  ;;  %p751_p1 = scmp.lt.s32.totalorder %s1000_s7, %s1000_s7 }
  0x1f   : > { %p744_p9 = scmp.ne.s32.totalorder %s1000_s7, %s743_s24  ;;  %p752_p12 = scmp.lt.s32.totalorder %s743_s24, %s743_s24 }
  0x21   : > { %p746_p10 = pnand %p744_p9, %p732_p13  ;;  %p753_p0 = por %p752_p12, %p751_p1 }
  0x23   : > { %p747_p6 = pneg %p746_p10 }
  0x25   : > { %p754_p4 = pnand %p753_p0, %p747_p6 }
  0x27   : > { %757 = shalt.err (!%p754_p4)
}
  0x28   : > { %s906_s25 = smov 64   ;;  %s907_s6 = smov 4  }
  0x29   : > { %654 = dma.hbm_to_vmem [thread:$0]  (!%p1007_p11), %s1208_s1, 256, %s1000_s7, [#allocation7], %s906_s25, %s906_s25, %s907_s6  }
  0x2a   : > { %s758_s14 = scalar_lea.hbm %s1210_s3, 256 }
  0x2b   : > { %p759_p1 = scmp.ne.s32.totalorder %s1210_s3, %s758_s14  ;;  %p765_p10 = scmp.lt.u32.totalorder %s758_s14, %s1210_s3 }
  0x2d   : > { %p761_p4 = pnand %p759_p1, %p732_p13 }
  0x2f   : > { %p762_p6 = pneg %p761_p4 }
  0x31   : > { %p767_p3 = pnand %p765_p10, %p762_p6 }
  0x33   : > { %770 = shalt.err (!%p767_p3)
}
  0x34   : > { %s771_s7 = scalar_lea.vmem %s1011_s10, 256  ;;  %p779_p12 = scmp.lt.s32.totalorder %s1011_s10, %s1011_s10 }
  0x35   : > { %p772_p5 = scmp.ne.s32.totalorder %s1011_s10, %s771_s7  ;;  %p780_p0 = scmp.lt.s32.totalorder %s771_s7, %s771_s7 }
  0x37   : > { %p774_p7 = pnand %p772_p5, %p732_p13  ;;  %p781_p1 = por %p780_p0, %p779_p12 }
  0x39   : > { %p775_p9 = pneg %p774_p7 }
  0x3b   : > { %p782_p4 = pnand %p781_p1, %p775_p9 }
  0x3d   : > { %785 = shalt.err (!%p782_p4)
}
  0x3e   : > { %657 = dma.hbm_to_vmem [thread:$0]  (!%p1007_p11), %s1210_s3, 256, %s1011_s10, [#allocation7], %s906_s25, %s906_s25, %s907_s6  }
  0x3f   : > { %s34_s12 = sadd.s32 1, %s898_s22  ;;  %s41_s13 = sadd.s32 1, %s890_s20 }
  0x40   : > { %p36_p13 = scmp.ge.s32.totalorder %s34_s12, 2  ;;  %p48_p6 = scmp.ne.s32.totalorder %s890_s20, %s886_s19 }
  0x41   : > { %p49_p10 = scmp.eq.s32.totalorder %s902_s23, 0  ;;  %p668_p3 = scmp.lt.s32.totalorder %s902_s23, 2 }
  0x42   : > { %s1236_s12 = smov (%p36_p13, %s34_s12), 0  ;;  %p1075_p7 = por %p980_p2, %p48_p6 }
  0x43   : > { %p50_p5 = por %p49_p10, %p48_p6  ;;  %s38_s14 = ssub.s32 %s898_s22, %s1236_s12 }
  0x44   : > { %s1223_s8 = scalar_select %p1075_p7, 1, 0 }
  0x45   : > { %s243_s15 = sand.u32 1, %s890_s20   ;;  %p39_p9 = scmp.eq.s32.totalorder %s38_s14, 0 }
  0x46   : > { %s598_s10 = sshll.u32 %s243_s15, 3  ;;  %s599_s25 = sshll.u32 %s898_s22, 7 }
  0x47   : > { %s1084_s6 = scalar_select %p39_p9, %s890_s20, %s41_s13  }
  0x48   : > { %s1089_s24 = scalar_lea.hbm %s1207_s0, %s599_s25  ;;  %s247_s27 = scalar_lea.vmem [#allocation3], %s598_s10 }
  0x49   : > { %s254_s7 = sshll.u32 %s247_s27, 4  ;;  %p1093_p2 = pnand %p668_p3, %p50_p5  ;;  %s1097_s7 = int_to_ptr.vmem [resolvable:$true] %s254_s7 }
  0x4a   : > { %s244_s11 = scalar_lea.sflag [#allocation4], %s243_s15  ;;  %s786_s13 = scalar_lea.hbm %s1089_s24, 128 }
  0x4b   : > { %p787_p11 = scmp.ne.s32.totalorder %s1089_s24, %s786_s13  ;;  %p788_p12 = pneg %p1093_p2 }
  0x4c   : > { %s791_s25 = scalar_lea.hbm %s1207_s0, 256  ;;  %p792_p4 = scmp.lt.u32.totalorder %s1089_s24, %s1207_s0 }
  0x4d   : > { %p789_p0 = pnand %p788_p12, %p787_p11  ;;  %p793_p13 = scmp.lt.u32.totalorder %s791_s25, %s786_s13 }
  0x4e   : > { %p795_p10 = scmp.lt.u32.totalorder %s786_s13, %s1089_s24 }
  0x4f   : > { %p790_p1 = pneg %p789_p0  ;;  %p794_p6 = por %p793_p13, %p792_p4 }
  0x51   : > { %p796_p3 = por %p795_p10, %p794_p6 }
  0x53   : > { %p797_p5 = pnand %p796_p3, %p790_p1 }
  0x55   : > { %800 = shalt.err (!%p797_p5)
}
  0x56   : > { %s801_s15 = scalar_lea.vmem %s1097_s7, 128  ;;  %s908_s27 = smov [#allocation3]  }
  0x57   : > { %p802_p9 = scmp.ne.s32.totalorder %s1097_s7, %s801_s15  ;;  %s806_s14 = sshll.u32 %s908_s27, 4  ;;  %s807_s14 = int_to_ptr.vmem [resolvable:$false] %s806_s14 }
  0x58   : > { %s808_s10 = scalar_lea.vmem %s807_s14, 256  ;;  %p809_p7 = scmp.lt.s32.totalorder %s1097_s7, %s807_s14 }
  0x59   : > { %p804_p11 = pnand %p802_p9, %p788_p12  ;;  %p810_p4 = scmp.lt.s32.totalorder %s808_s10, %s801_s15 }
  0x5b   : > { %p805_p0 = pneg %p804_p11  ;;  %p811_p13 = por %p810_p4, %p809_p7 }
  0x5d   : > { %p812_p6 = pnand %p811_p13, %p805_p0 }
  0x5f   : > { %815 = shalt.err (!%p812_p6)
}
  0x60   : > { %661 = dma.hbm_to_vmem [thread:$0]  (!%p1093_p2), %s1089_s24, 128, %s1097_s7, %s244_s11  }
  0x61   : > { %263 = sbr.rel (%p996_p8) target bundleno = 574 (0x23e), region = 40  ;;  %s1127_s13 = sand.u32 (!%p996_p8), 1, %s886_s19  }
  0x62   : > { %s601_s25 = sshll.u32 (!%p996_p8), %s1127_s13, 3  ;;  %s266_s16 = scalar_lea.sflag (!%p996_p8), [#allocation4], %s1127_s13 }
  0x63   : > { %s269_s17 = scalar_lea.vmem (!%p996_p8), [#allocation3], %s601_s25  ;;  %p1225_p7 = scmp.ne.s32.totalorder (!%p996_p8), %s1219_s28, 0 }
  0x68   : > { %869 = dma.done.wait (%p1225_p7), %s266_s16, 128  }
  0x69   : > { %871 = vsyncadd (%p1225_p7), %s266_s16, 4294967168  ;;  %p1226_p2 = scmp.ne.s32.totalorder %s1217_s26, 0 }
  0x6b   : > { %873 = dma.done.wait (%p1226_p2), [#allocation7], 512  }
  0x6c   : > { %875 = vsyncadd (%p1226_p2), [#allocation7], 4294966784  ;;  %vm316_vm0 = vcmask 261120   ;;  %v909_v0 = vmov 0.0   ;;  %vm910_vm1 = vmmov 0   ;;  %v726_v1 = vld [vmem:[#allocation6] sm:$0xff]  }
  0x6d   : > { %623 = vmatprep.subr.bf16.mxu0 %v909_v0  ;;  %627 = vmatprep.mubr.msk.bf16.mxu0 %vm910_vm1, %v909_v0  ;;  %317 = vst.msk [vmem:[#allocation2] sm:$0xff] %vm316_vm0, %v909_v0  ;;  %v727_v2 = vld [vmem:[#allocation6 + $0x8] sm:$0xff]   ;;  %v318_v3 = vld [vmem:[%s269_s17] sm:$0xff]  ;;  %s614_s7 = sshll.u32 %s894_s21, 7  ;;  %s306_s9 = scalar_lea.vmem [#allocation9], %s601_s25 }
  0x6e   : > { %631 = vmatprep.subr.bf16.mxu1 %v909_v0  ;;  %635 = vmatprep.mubr.msk.bf16.mxu1 %vm910_vm1, %v909_v0  ;;  %v319_v4 = vpack.c.bf16 %v318_v3, %v318_v3  ;;  %v728_v5 = vld [vmem:[#allocation8] sm:$0xff]   ;;  %v729_v6 = vld [vmem:[#allocation8 + $0x8] sm:$0xff]   ;;  %v605_v7 = vld [vmem:[%s1209_s2] ss:$0 sm:$0xff]  ;;  %s478_s11 = sshll.u32 %s306_s9, 4  ;;  %s1157_s14 = scalar_lea.hbm %s1212_s5, %s614_s7  ;;  %s1159_s11 = int_to_ptr.vmem [resolvable:$true] %s478_s11 }
  0x6f   : > { %624 = vmatpush3.bf16.msra.mxu0 %v726_v1  ;;  %632 = vmatpush3.bf16.msra.mxu1 %v728_v5  ;;  %v612_v21 = vld [vmem:[%s1211_s4] ss:$0 sm:$0xff]  ;;  %s465_s10 = scalar_lea.sflag [#allocation5], %s1127_s13  ;;  %s816_s16 = scalar_lea.vmem %s1159_s11, 128 }
  0x70   : > { %625 = vmatprep.subr.bf16.mxu0 %v909_v0  ;;  %633 = vmatprep.subr.bf16.mxu1 %v909_v0  ;;  %p817_p8 = scmp.ne.s32.totalorder %s1159_s11, %s816_s16  ;;  %p1227_p12 = scmp.ne.s32.totalorder %s1223_s8, 0 }
  0x71   : > { %s911_s21 = smov [#allocation9]  }
  0x72   : > { %p818_p1 = pnand %p817_p8, %p1227_p12  ;;  %s820_s25 = sshll.u32 %s911_s21, 4  ;;  %s821_s25 = int_to_ptr.vmem [resolvable:$false] %s820_s25 }
  0x73   : > { %626 = vmatpush3.bf16.msra.mxu0 %v727_v2  ;;  %634 = vmatpush3.bf16.msra.mxu1 %v729_v6  ;;  %s822_s17 = scalar_lea.vmem %s821_s25, 256  ;;  %p823_p3 = scmp.lt.s32.totalorder %s1159_s11, %s821_s25 }
  0x74   : > { %v389_v15 = vld [vmem:[#allocation2] sm:$0xff]  ;;  %p819_p10 = pneg %p818_p1  ;;  %p824_p5 = scmp.lt.s32.totalorder %s822_s17, %s816_s16 }
  0x76   : > { %628 = vmatmul.mubr.msk.bf16.vlgmr.msra.gmra.mrb[0].mxu0 %vm316_vm0, %v319_v4  ;;  %p825_p9 = por %p824_p5, %p823_p3 }
  0x78   : > { %p826_p11 = pnand %p825_p9, %p819_p10 }
 0x149   : > { %v381_v8 = vpop.f32.mrb[0].mxu0 }
 0x14a   : > { %v382_v9 = vadd.f32 %v605_v7, %v381_v8  ;;  %v629_v10 = vpop.f32.mrb[1].mxu0 }
 0x14b   : > { %v384_v11 = vpop.f32.mrb[2].mxu0 }
 0x14c   : > { %v387_v12 = vmax.f32 %v382_v9, 0.0  ;;  %v630_v13 = vpop.f32.mrb[3].mxu0 }
 0x14e   : > { %v388_v14 = vpack.c.bf16 %v387_v12, %v387_v12 }
 0x150   : > { %636 = vmatmul.mubr.msk.bf16.vlgmr.msra.gmra.mrb[0].mxu1 %vm316_vm0, %v388_v14 }
 0x223   : > { %v443_v16 = vpop.f32.mrb[0].mxu1 }
 0x224   : > { %v449_v17 = vadd.f32 %v443_v16, %v389_v15  ;;  %v637_v18 = vpop.f32.mrb[1].mxu1 }
 0x225   : > { %v446_v19 = vpop.f32.mrb[2].mxu1 }
 0x226   : > { %450 = vst.msk [vmem:[#allocation2] sm:$0xff] %vm316_vm0, %v449_v17  ;;  %v638_v20 = vpop.f32.mrb[3].mxu1 }
 0x22d   : > { %v454_v22 = vld [vmem:[#allocation2] sm:$0xff] }
 0x22e   : > { %v462_v23 = vadd.f32 %v612_v21, %v454_v22 }
 0x230   : > { %463 = vst.msk [vmem:[%s306_s9] sm:$0xff] %vm316_vm0, %v462_v23 }
 0x231   : > { %829 = shalt.err (!%p826_p11)
}
 0x232   : > { %s830_s13 = scalar_lea.hbm %s1157_s14, 128  ;;  %s834_s30 = scalar_lea.hbm %s1212_s5, 256 }
 0x233   : > { %p831_p0 = scmp.ne.s32.totalorder %s1157_s14, %s830_s13  ;;  %p835_p6 = scmp.lt.u32.totalorder %s1157_s14, %s1212_s5 }
 0x234   : > { %p836_p7 = scmp.lt.u32.totalorder %s834_s30, %s830_s13  ;;  %p838_p8 = scmp.lt.u32.totalorder %s830_s13, %s1157_s14 }
 0x235   : > { %p832_p4 = pnand %p831_p0, %p1227_p12 }
 0x236   : > { %p837_p2 = por %p836_p7, %p835_p6 }
 0x237   : > { %p833_p13 = pneg %p832_p4 }
 0x238   : > { %p839_p1 = por %p838_p8, %p837_p2 }
 0x23a   : > { %p840_p10 = pnand %p839_p1, %p833_p13 }
 0x23c   : > { %843 = shalt.err (!%p840_p10)
}
 0x23d   : > { %649 = dma.vmem_to_hbm [thread:$0]  (%p1227_p12), %s1159_s11, 128, %s1157_s14, %s465_s10  }
 0x23e PF: > { %s490_s9 = sand.u32 1, %s882_s18   ;;  %p1228_p3 = scmp.ne.s32.totalorder %s1220_s29, 0 }
 0x23f   : > { %p1229_p5 = scmp.ge.s32.totalorder %s902_s23, 2  ;;  %s491_s15 = scalar_lea.sflag [#allocation5], %s490_s9 }
 0x241   : > { %p663_p9 = pnand %p1229_p5, %p1228_p3 }
 0x243   : > { %877 = dma.done.wait (!%p663_p9), %s491_s15, 128  }
 0x244   : > { %879 = vsyncadd (!%p663_p9), %s491_s15, 4294967168  ;;  %s22_s23 = sadd.s32 1, %s902_s23   ;;  %s1230_s18 = smov %s886_s19 }
 0x245   : > { %p19_p11 = scmp.ge.s32.totalorder %s22_s23, 4   ;;  %s1231_s19 = smov %s890_s20 }
 0x246   : > { %s1232_s20 = smov %s1084_s6  ;;  %s1233_s21 = smov %s898_s22 }
 0x247   : > { %s1234_s22 = smov %s1236_s12  ;;  %21 = sbr.rel (!%p19_p11) target bundleno = 7 (0x7), region = 106 }
 0x24e   :  { %496 = vsyncpa [#allocation4], 1 }
 0x24f   :  { %498 = vsyncpa [#allocation4 + $0x1], 1 }
 0x250   :  { %499 = vsyncpa [#allocation7], 1 }
 0x251   :  { %500 = vsyncpa [#allocation5], 1 }
 0x252   :  { %502 = vsyncpa [#allocation5 + $0x1], 1 }

</bundles_post_ra>
